<compile_context>
chip_gen: v7x
topology: tpu7x:2x2x1
jax: 0.10.0
libtpu: 0.0.40
codegen_flags: <defaults>
</compile_context>

<pallas_src>
import numpy as np
import jax
import jax.numpy as jnp
from jax.experimental import pallas as pl
from jax.experimental.pallas import tpu as pltpu


# ----------------------------- config (small, deterministic demo shapes) -----------------------------
FEATURE_DIM = 8          # config.feature_dim
NUM_2D_LEVELS = 4        # config.num_2d_levels
TABLE_2D_SIZE = 4096     # config.hash_table_2d_size is 2**17; shrunk for the demo
LANES = 128              # TPU lane width
MAX_TILE_ROWS = 2048     # 2048 x 128 x 4 B = 1 MiB per block (double-buffered -> 2 MiB)


# ----------------------------- kernel 1: per-(sublane,lane) positive counts -----------------------------
def _make_count_kernel(tiles_per_chunk, valid_rows_last_tile):
    """Accumulate (x > 0) counts of the lane-dense table into a (1, 8, 128) int32 block.

    tiles_per_chunk / valid_rows_last_tile are Python ints (compile-time constants), so the
    tail-mask path is only emitted when the last tile is actually partial.
    """
    def kernel(x_ref, out_ref):
        t = pl.program_id(1)

        @pl.when(t == 0)
        def _():
            out_ref[...] = jnp.zeros_like(out_ref)

        x = x_ref[...]                                   # (1, tile, 128) f32
        pos = (x > 0.0).astype(jnp.int32)                # VPU compare + select

        if valid_rows_last_tile == 0:
            # Hot path: pure vreg adds (no iota, no mask, no cross-lane reduce).
            out_ref[...] += pos.reshape(1, -1, 8, LANES).sum(axis=1)
        else:
            last = tiles_per_chunk - 1

            @pl.when(t != last)
            def _():
                out_ref[...] += pos.reshape(1, -1, 8, LANES).sum(axis=1)

            @pl.when(t == last)
            def _():
                row = jax.lax.broadcasted_iota(jnp.int32, pos.shape, 1)
                masked = jnp.where(row < valid_rows_last_tile, pos, 0)
                out_ref[...] += masked.reshape(1, -1, 8, LANES).sum(axis=1)

    return kernel


# ----------------------------- kernel 2: lane-dense row broadcast (pure writeback) -----------------------------
def _broadcast_kernel(p_ref, out_ref):
    # p_ref is the (1, 128) probs row (16 tiled copies of the 8-wide prob vector);
    # each grid step writes one full-lane (tile2, 128) output block.
    out_ref[...] = jnp.broadcast_to(p_ref[...], out_ref.shape)


# ----------------------------- wrapper -----------------------------
def dimension_wise_context_forward(embeddings_2d_list, embeddings_3d, level, w_t, b):
    """Pallas implementation of DimensionWiseContextModel.forward.

    embeddings_3d is accepted but unused, exactly as in the torch forward.
    w_t is the nn.Linear(1, F) weight transposed to shape [1, F]; b is the bias as [1, F].
    """
    del embeddings_3d  # unused by the torch forward as well
    current = embeddings_2d_list[level]                   # [T, F] float32
    n_rows, feat = current.shape
    numel = n_rows * feat

    # Preconditions of the lane-dense fast path (hold for the module's real shapes:
    # feature_dim=8, hash_table_2d_size=2**17).
    assert LANES % feat == 0, "feature_dim must divide 128"
    assert numel % (8 * LANES) == 0, "T*F must be a multiple of 1024 for the lane-dense layout"
    # TODO(synk): add a small-table fallback path if T*F is ever not a multiple of 1024.

    n_dense = numel // LANES                              # rows of the [n_dense, 128] dense view

    # --- pass 1: positive-count partial sums (lane-dense, big blocks, optional megacore split) ---
    num_chunks = 2 if (n_dense % 16 == 0 and n_dense >= 16) else 1
    rows_per_chunk = n_dense // num_chunks
    tile = min(MAX_TILE_ROWS, rows_per_chunk)
    tiles_per_chunk = pl.cdiv(rows_per_chunk, tile)
    rem = rows_per_chunk % tile                           # >0 only if the last tile is partial

    x_dense = current.reshape(num_chunks, rows_per_chunk, LANES)   # free row-major reshape

    partial = pl.pallas_call(
        _make_count_kernel(tiles_per_chunk, rem),
        out_shape=jax.ShapeDtypeStruct((num_chunks, 8, LANES), jnp.int32),
        grid=(num_chunks, tiles_per_chunk),
        in_specs=[pl.BlockSpec((1, tile, LANES), lambda c, t: (c, t, 0))],
        out_specs=pl.BlockSpec((1, 8, LANES), lambda c, t: (c, 0, 0)),
        compiler_params=pltpu.CompilerParams(
            dimension_semantics=("parallel", "arbitrary")),
    )(x_dense)

    # --- tiny finalize, computed ONCE (trivial XLA glue; exact int32 count) ---
    count = jnp.sum(partial)                                            # int32, exact
    freq = count.astype(jnp.float32) / jnp.float32(float(numel) + 1e-8)
    probs = jax.nn.sigmoid(freq * w_t + b)                              # [1, F]
    probs128 = jnp.tile(probs, (1, LANES // feat))                      # [1, 128] lane-dense row

    # --- pass 2: broadcast-store [n_dense, 128] (pure HBM writeback; >=2 parallel steps) ---
    tile2 = min(MAX_TILE_ROWS, n_dense)
    if tile2 == n_dense and n_dense >= 16:
        tile2 = max(8, ((n_dense // 2) // 8) * 8)   # give megacore at least 2 parallel steps

    out_dense = pl.pallas_call(
        _broadcast_kernel,
        out_shape=jax.ShapeDtypeStruct((n_dense, LANES), jnp.float32),
        grid=(pl.cdiv(n_dense, tile2),),
        in_specs=[pl.BlockSpec((1, LANES), lambda i: (0, 0))],
        out_specs=pl.BlockSpec((tile2, LANES), lambda i: (i, 0)),
        compiler_params=pltpu.CompilerParams(dimension_semantics=("parallel",)),
    )(probs128)

    return out_dense.reshape(n_rows, feat)                # free reshape back to [T, F]


# ----------------------------- pure-numpy reference (torch semantics) -----------------------------
def reference(embeddings_2d_list, level, w_t, b):
    cur = np.asarray(embeddings_2d_list[level])
    cnt = float((cur > 0).sum())                                           # binarized +1 count
    freq = np.float32(cnt) / (np.float32(cur.size) + np.float32(1e-8))
    logits = freq * np.asarray(w_t, dtype=np.float64) + np.asarray(b, dtype=np.float64)  # [1, F]
    probs = 1.0 / (1.0 + np.exp(-logits))
    if probs.shape[0] == 1 and cur.shape[0] > 1:
        probs = np.broadcast_to(probs, (cur.shape[0], probs.shape[1]))
    return probs.astype(np.float32)


# ----------------------------- main -----------------------------
if __name__ == "__main__":
    key = jax.random.PRNGKey(0)
    k_emb2d, k_emb3d, k_w, k_b = jax.random.split(key, 4)

    # Per-level 2D hash-embedding tables (init ~ uniform(-1e-4, 1e-4) like the encoder).
    embeddings_2d_list = [
        jax.random.uniform(
            jax.random.fold_in(k_emb2d, lvl),
            (TABLE_2D_SIZE, FEATURE_DIM),
            dtype=jnp.float32, minval=-1e-4, maxval=1e-4,
        )
        for lvl in range(NUM_2D_LEVELS)
    ]
    # 3D voxel features — unused by forward(), matching the torch module.
    embeddings_3d = jax.random.uniform(
        k_emb3d, (16, 16, 16), dtype=jnp.float32, minval=-1e-4, maxval=1e-4
    )
    # nn.Linear(1, feature_dim): weight [F, 1], bias [F]; pass weight.T as [1, F], bias as [1, F].
    w_t = jax.random.uniform(k_w, (1, FEATURE_DIM), dtype=jnp.float32, minval=-1.0, maxval=1.0)
    b = jax.random.uniform(k_b, (1, FEATURE_DIM), dtype=jnp.float32, minval=-1.0, maxval=1.0)
    level = 2

    out = dimension_wise_context_forward(embeddings_2d_list, embeddings_3d, level, w_t, b)
    out = jax.block_until_ready(out)

    ref = reference(embeddings_2d_list, level, w_t, b)
    assert out.shape == (TABLE_2D_SIZE, FEATURE_DIM), out.shape
    assert np.allclose(np.asarray(out), ref, rtol=1e-5, atol=1e-6), "mismatch vs reference"

    print("KERNEL_OK")
</pallas_src>

<mosaic_0001>
module attributes {stable_mosaic.version = 11 : i64} {
  func.func @kernel(%arg0: i32, %arg1: i32, %arg2: memref<1x128x128xf32, #tpu.memory_space<vmem>>, %arg3: memref<1x8x128xi32, #tpu.memory_space<vmem>>) attributes {dimension_semantics = [#tpu.dimension_semantics<parallel>, #tpu.dimension_semantics<arbitrary>], iteration_bounds = array<i64: 2, 1>, scalar_prefetch = 0 : i64, scratch_operands = 0 : i64, tpu.core_type = #tpu.core_type<tc>, window_params = [{transform_indices = @transform_0, window_bounds = array<i64: 1, 128, 128>}, {transform_indices = @transform_1, window_bounds = array<i64: 1, 8, 128>}]} {
    %c0_i32 = arith.constant 0 : i32
    %0 = arith.cmpi eq, %arg1, %c0_i32 : i32
    %1 = arith.extui %0 : i1 to i32
    %c0_i32_0 = arith.constant 0 : i32
    %2 = arith.cmpi ne, %1, %c0_i32_0 : i32
    scf.if %2 {
      %c0_i32_10 = arith.constant 0 : i32
      %12 = vector.broadcast %c0_i32_10 : i32 to vector<1x8x128xi32>
      %c0_11 = arith.constant 0 : index
      %c0_12 = arith.constant 0 : index
      %c0_13 = arith.constant 0 : index
      %13 = vector.load %arg3[%c0_11, %c0_12, %c0_13] : memref<1x8x128xi32, #tpu.memory_space<vmem>>, vector<1x8x128xi32>
      tpu.vector_store %arg3[%c0_11, %c0_12, %c0_13], %12 {strides = array<i32>} : memref<1x8x128xi32, #tpu.memory_space<vmem>>, vector<1x8x128xi32>,
    } else {
    }
    %c0 = arith.constant 0 : index
    %c0_1 = arith.constant 0 : index
    %c0_2 = arith.constant 0 : index
    %3 = vector.load %arg2[%c0, %c0_1, %c0_2] : memref<1x128x128xf32, #tpu.memory_space<vmem>>, vector<1x128x128xf32>
    %cst = arith.constant 0.000000e+00 : f32
    %4 = vector.broadcast %cst : f32 to vector<1x128x128xf32>
    %5 = arith.cmpf ogt, %3, %4 : vector<1x128x128xf32>
    %6 = arith.extui %5 : vector<1x128x128xi1> to vector<1x128x128xi32>
    %c0_3 = arith.constant 0 : index
    %c0_4 = arith.constant 0 : index
    %c0_5 = arith.constant 0 : index
    %7 = vector.load %arg3[%c0_3, %c0_4, %c0_5] : memref<1x8x128xi32, #tpu.memory_space<vmem>>, vector<1x8x128xi32>
    %8 = vector.shape_cast %6 : vector<1x128x128xi32> to vector<1x16x8x128xi32>
    %cst_6 = arith.constant dense<0> : vector<1x8x128xi32>
    %9 = vector.multi_reduction <add>, %8, %cst_6 [1] : vector<1x16x8x128xi32> to vector<1x8x128xi32>
    %10 = arith.addi %7, %9 : vector<1x8x128xi32>
    %c0_7 = arith.constant 0 : index
    %c0_8 = arith.constant 0 : index
    %c0_9 = arith.constant 0 : index
    %11 = vector.load %arg3[%c0_7, %c0_8, %c0_9] : memref<1x8x128xi32, #tpu.memory_space<vmem>>, vector<1x8x128xi32>
    tpu.vector_store %arg3[%c0_7, %c0_8, %c0_9], %10 {strides = array<i32>} : memref<1x8x128xi32, #tpu.memory_space<vmem>>, vector<1x8x128xi32>,
    return
  }
  func.func @transform_0(%arg0: i32, %arg1: i32) -> (i32, i32, i32) {
    %c0_i32 = arith.constant 0 : i32
    %c0_i32_0 = arith.constant 0 : i32
    return %arg0, %arg1, %c0_i32 : i32, i32, i32
  }
  func.func @transform_1(%arg0: i32, %arg1: i32) -> (i32, i32, i32) {
    %c0_i32 = arith.constant 0 : i32
    %c0_i32_0 = arith.constant 0 : i32
    %c0_i32_1 = arith.constant 0 : i32
    return %arg0, %c0_i32, %c0_i32_0 : i32, i32, i32
  }
}

</mosaic_0001>

<bundles_post_ra>
// kernel: tpu_custom_call.1
= control target key start
LH: loop header
LB: loop body
LE: loop exit
PB: predicated region body
PF: predicated region fallthrough
CT: control target
= control target key end

     0   :  { %6 = vsyncpa [#allocation3], 0  ;;  %s713_s0 = inlined_call_operand.hbm [shape: f32[2,128,128], index: 0, kind: input, shape index: {}]   ;;  %s714_s1 = inlined_call_operand.hbm [shape: s32[2,8,128], index: 1, kind: output, shape index: {}]  }
   0x1   :  { %8 = vsyncpa [#allocation3 + $0x1], 0 }
   0x2   :  { %9 = vsyncpa [#allocation4], 0 }
   0x3   :  { %11 = vsyncpa [#allocation4 + $0x1], 0  ;;  %s527_s6 = smov 0   ;;  %s529_s7 = smov 0  }
   0x4   :  { %s531_s8 = smov 0   ;;  %s533_s9 = smov 0  }
   0x5   :  { %s535_s10 = smov 0   ;;  %s537_s11 = smov 0  }
   0x6 LB: > { %s318_s12 = sadd.s32 4294967295, %s510_s11   ;;  %s319_s13 = sadd.s32 4294967294, %s510_s11   ;;  %s510_s11 = sphi %s537_s11, %s17_s11   ;;  %s506_s10 = sphi %s535_s10, %s729_s10   ;;  %s502_s9 = sphi %s533_s9, %s728_s9   ;;  %s498_s8 = sphi %s531_s8, %s727_s8   ;;  %s494_s7 = sphi %s529_s7, %s726_s7   ;;  %s490_s6 = sphi %s527_s6, %s725_s6  }
   0x7   : > { %s29_s14 = sadd.s32 1, %s506_s10  ;;  %s38_s15 = sadd.s32 1, %s498_s8 }
   0x8   : > { %p31_p0 = scmp.ge.s32.totalorder %s29_s14, 2  ;;  %p45_p1 = scmp.ne.s32.totalorder %s498_s8, %s494_s7 }
   0x9   : > { %p46_p2 = scmp.eq.s32.totalorder %s510_s11, 0  ;;  %p51_p3 = scmp.ne.s32.totalorder %s494_s7, %s490_s6 }
   0xa   : > { %s731_s14 = smov (%p31_p0, %s29_s14), 0  ;;  %p52_p5 = scmp.eq.s32.totalorder %s318_s12, 0 }
   0xb   : > { %p568_p4 = por %p46_p2, %p45_p1  ;;  %s33_s17 = ssub.s32 %s506_s10, %s731_s14 }
   0xc   : > { %p75_p6 = scmp.eq.s32.totalorder %s318_s12, 1  ;;  %p36_p7 = scmp.eq.s32.totalorder %s33_s17, 0 }
   0xd   : > { %p574_p8 = por %p52_p5, %p51_p3  ;;  %p81_p10 = scmp.eq.s32.totalorder %s319_s13, 1 }
   0xe   : > { %p578_p9 = por %p75_p6, %p45_p1  ;;  %p345_p13 = scmp.lt.s32.totalorder %s510_s11, 2 }
   0xf   : > { %s583_s20 = scalar_select %p36_p7, %s498_s8, %s38_s15  }
  0x10   : > { %s718_s19 = scalar_select %p578_p9, 1, 0 }
  0x11   : > { %p585_p11 = por %p81_p10, %p51_p3  ;;  %s101_s22 = sand.u32 1, %s498_s8  }
  0x12   : > { %s322_s23 = sshll.u32 %s101_s22, 7  ;;  %s332_s24 = sshll.u32 %s506_s10, 11 }
  0x13   : > { %s719_s21 = scalar_select %p585_p11, 1, 0 }
  0x14   : > { %s596_s27 = scalar_lea.hbm %s713_s0, %s332_s24  ;;  %s105_s28 = scalar_lea.vmem [#allocation2], %s322_s23 }
  0x15   : > { %s114_s29 = sshll.u32 %s105_s28, 4  ;;  %p602_p0 = pnand %p345_p13, %p568_p4  ;;  %s598_s29 = int_to_ptr.vmem [resolvable:$true] %s114_s29 }
  0x16   : > { %s607_s2 = scalar_lea.sflag [#allocation3], %s101_s22  ;;  %s398_s3 = scalar_lea.hbm %s596_s27, 2048 }
  0x17   : > { %p399_p2 = scmp.ne.s32.totalorder %s596_s27, %s398_s3  ;;  %p400_p3 = pneg %p602_p0 }
  0x18   : > { %s403_s12 = scalar_lea.hbm %s713_s0, 4096  ;;  %p404_p4 = scmp.lt.u32.totalorder %s596_s27, %s713_s0 }
  0x19   : > { %p401_p5 = pnand %p400_p3, %p399_p2  ;;  %p405_p7 = scmp.lt.u32.totalorder %s403_s12, %s398_s3 }
  0x1a   : > { %p407_p13 = scmp.lt.u32.totalorder %s398_s3, %s596_s27 }
  0x1b   : > { %p402_p6 = pneg %p401_p5  ;;  %p406_p10 = por %p405_p7, %p404_p4 }
  0x1d   : > { %p408_p12 = por %p407_p13, %p406_p10 }
  0x1f   : > { %p409_p1 = pnand %p408_p12, %p402_p6 }
  0x21   : > { %412 = shalt.err (!%p409_p1)
}
  0x22   : > { %s413_s16 = scalar_lea.vmem %s598_s29, 2048  ;;  %s512_s17 = smov [#allocation2]  }
  0x23   : > { %p414_p2 = scmp.ne.s32.totalorder %s598_s29, %s413_s16  ;;  %s418_s22 = sshll.u32 %s512_s17, 4  ;;  %s419_s22 = int_to_ptr.vmem [resolvable:$false] %s418_s22 }
  0x24   : > { %s420_s23 = scalar_lea.vmem %s419_s22, 4096  ;;  %p421_p9 = scmp.lt.s32.totalorder %s598_s29, %s419_s22 }
  0x25   : > { %p416_p5 = pnand %p414_p2, %p400_p3  ;;  %p422_p4 = scmp.lt.s32.totalorder %s420_s23, %s413_s16 }
  0x27   : > { %p417_p11 = pneg %p416_p5  ;;  %p423_p7 = por %p422_p4, %p421_p9 }
  0x29   : > { %p424_p10 = pnand %p423_p7, %p417_p11 }
  0x2b   : > { %427 = shalt.err (!%p424_p10)
}
  0x2c   : > { %s513_s24 = smov 128   ;;  %s514_s25 = smov 8  }
  0x2d   : > { %340 = dma.hbm_to_vmem [thread:$0]  (!%p602_p0), %s596_s27, 2048, %s598_s29, %s607_s2, %s513_s24, %s513_s24, %s514_s25  }
  0x2e   : > { %p122_p12 = scmp.lt.s32.totalorder %s510_s11, 3  ;;  %p721_p1 = scmp.ge.s32.totalorder %s510_s11, 1 }
  0x30   : > { %p123_p3 = pnand %p721_p1, %p122_p12 }
  0x31   : > { %s639_s26 = sand.u32 (!%p123_p3), 1, %s494_s7  }
  0x32   : > { %126 = sbr.rel (%p123_p3) target bundleno = 92 (0x5c), region = 24  ;;  %s326_s28 = sshll.u32 (!%p123_p3), %s639_s26, 7 }
  0x33   : > { %s129_s3 = scalar_lea.sflag (!%p123_p3), [#allocation3], %s639_s26  ;;  %s132_s4 = scalar_lea.vmem (!%p123_p3), [#allocation2], %s326_s28 }
  0x39   : > { %481 = dma.done.wait (%p574_p8), %s129_s3, 2048  }
  0x3a   : > { %483 = vsyncadd (%p574_p8), %s129_s3, 4294965248  ;;  %v157_v0 = vld [vmem:[%s132_s4] sm:$0xff]  ;;  %v158_v1 = vld [vmem:[%s132_s4 + $0x8] sm:$0xff]  ;;  %v515_v16 = vmov 0   ;;  %s327_s18 = sshll.u32 %s639_s26, 3  ;;  %s329_s27 = sshll.u32 %s502_s9, 7 }
  0x3b   : > { %v159_v2 = vld [vmem:[%s132_s4 + $0x10] sm:$0xff]  ;;  %v160_v3 = vld [vmem:[%s132_s4 + $0x18] sm:$0xff]  ;;  %v161_v4 = vld [vmem:[%s132_s4 + $0x20] sm:$0xff]  ;;  %vm173_vm0 = vcmp.gt.f32.partialorder %v157_v0, 0.0  ;;  %vm174_vm1 = vcmp.gt.f32.partialorder %v158_v1, 0.0  ;;  %s150_s29 = scalar_lea.vmem [#allocation5], %s327_s18  ;;  %s664_s12 = scalar_lea.hbm %s714_s1, %s329_s27 }
  0x3c   : > { %v162_v5 = vld [vmem:[%s132_s4 + $0x28] sm:$0xff]  ;;  %v163_v6 = vld [vmem:[%s132_s4 + $0x30] sm:$0xff]  ;;  %v164_v7 = vld [vmem:[%s132_s4 + $0x38] sm:$0xff]  ;;  %vm175_vm2 = vcmp.gt.f32.partialorder %v159_v2, 0.0  ;;  %vm176_vm3 = vcmp.gt.f32.partialorder %v160_v3, 0.0  ;;  %vm177_vm4 = vcmp.gt.f32.partialorder %v161_v4, 0.0 }
  0x3d   : > { %v165_v8 = vld [vmem:[%s132_s4 + $0x40] sm:$0xff]  ;;  %v166_v9 = vld [vmem:[%s132_s4 + $0x48] sm:$0xff]  ;;  %v167_v10 = vld [vmem:[%s132_s4 + $0x50] sm:$0xff]  ;;  %vm178_vm5 = vcmp.gt.f32.partialorder %v162_v5, 0.0  ;;  %vm179_vm6 = vcmp.gt.f32.partialorder %v163_v6, 0.0  ;;  %vm180_vm7 = vcmp.gt.f32.partialorder %v164_v7, 0.0 }
  0x3e   : > { %v168_v11 = vld [vmem:[%s132_s4 + $0x58] sm:$0xff]  ;;  %v169_v12 = vld [vmem:[%s132_s4 + $0x60] sm:$0xff]  ;;  %vm181_vm8 = vcmp.gt.f32.partialorder %v165_v8, 0.0  ;;  %v170_v13 = vld [vmem:[%s132_s4 + $0x68] sm:$0xff]  ;;  %vm182_vm9 = vcmp.gt.f32.partialorder %v166_v9, 0.0  ;;  %vm183_vm10 = vcmp.gt.f32.partialorder %v167_v10, 0.0 }
  0x3f   : > { %v171_v14 = vld [vmem:[%s132_s4 + $0x70] sm:$0xff]  ;;  %v172_v15 = vld [vmem:[%s132_s4 + $0x78] sm:$0xff]  ;;  %vm184_vm11 = vcmp.gt.f32.partialorder %v168_v11, 0.0  ;;  %v189_v17 = vsel %vm173_vm0, 1, %v515_v16  ;;  %v190_v18 = vsel %vm174_vm1, 1, %v515_v16  ;;  %v191_v19 = vsel %vm175_vm2, 1, %v515_v16 }
  0x40   : > { %v192_v20 = vsel %vm176_vm3, 1, %v515_v16  ;;  %v193_v21 = vsel %vm177_vm4, 1, %v515_v16  ;;  %v194_v22 = vsel %vm178_vm5, 1, %v515_v16  ;;  %v195_v23 = vsel %vm179_vm6, 1, %v515_v16  ;;  %s237_s30 = sshll.u32 %s150_s29, 4  ;;  %s224_s13 = scalar_lea.sflag [#allocation4], %s639_s26  ;;  %s666_s30 = int_to_ptr.vmem [resolvable:$true] %s237_s30 }
  0x41   : > { %v196_v24 = vsel %vm180_vm7, 1, %v515_v16  ;;  %vm185_vm12 = vcmp.gt.f32.partialorder %v169_v12, 0.0  ;;  %vm186_vm13 = vcmp.gt.f32.partialorder %v170_v13, 0.0  ;;  %vm187_vm14 = vcmp.gt.f32.partialorder %v171_v14, 0.0  ;;  %s428_s15 = scalar_lea.vmem %s666_s30, 128  ;;  %p722_p9 = scmp.ne.s32.totalorder %s718_s19, 0 }
  0x42   : > { %vm188_vm15 = vcmp.gt.f32.partialorder %v172_v15, 0.0  ;;  %v197_v25 = vsel %vm181_vm8, 1, %v515_v16  ;;  %v198_v26 = vsel %vm182_vm9, 1, %v515_v16  ;;  %v199_v27 = vsel %vm183_vm10, 1, %v515_v16  ;;  %p429_p8 = scmp.ne.s32.totalorder %s666_s30, %s428_s15  ;;  %s516_s9 = smov [#allocation5]  }
  0x43   : > { %v200_v28 = vsel %vm184_vm11, 1, %v515_v16  ;;  %v206_v29 = vadd.s32 %v193_v21, %v189_v17  ;;  %v207_v30 = vadd.s32 %v194_v22, %v190_v18  ;;  %v208_v31 = vadd.s32 %v195_v23, %v191_v19  ;;  %s432_s16 = sshll.u32 %s516_s9, 4  ;;  %s433_s16 = int_to_ptr.vmem [resolvable:$false] %s432_s16 }
  0x44   : > { %v209_v32 = vadd.s32 %v196_v24, %v192_v20  ;;  %v201_v33 = vsel %vm185_vm12, 1, %v515_v16  ;;  %v202_v34 = vsel %vm186_vm13, 1, %v515_v16  ;;  %v203_v35 = vsel %vm187_vm14, 1, %v515_v16  ;;  %p430_p11 = pnand %p429_p8, %p722_p9  ;;  %s434_s17 = scalar_lea.vmem %s433_s16, 256 }
  0x45   : > { %v204_v36 = vsel %vm188_vm15, 1, %v515_v16  ;;  %v210_v37 = vadd.s32 %v206_v29, %v197_v25  ;;  %v211_v38 = vadd.s32 %v207_v30, %v198_v26  ;;  %v212_v39 = vadd.s32 %v208_v31, %v199_v27  ;;  %p435_p6 = scmp.lt.s32.totalorder %s666_s30, %s433_s16  ;;  %p436_p13 = scmp.lt.s32.totalorder %s434_s17, %s428_s15 }
  0x46   : > { %v213_v40 = vadd.s32 %v209_v32, %v200_v28  ;;  %p431_p0 = pneg %p430_p11 }
  0x47   : > { %v214_v41 = vadd.s32 %v210_v37, %v201_v33  ;;  %v215_v42 = vadd.s32 %v211_v38, %v202_v34  ;;  %v216_v43 = vadd.s32 %v212_v39, %v203_v35  ;;  %p437_p2 = por %p436_p13, %p435_p6 }
  0x48   : > { %v217_v44 = vadd.s32 %v213_v40, %v204_v36 }
  0x49   : > { %v218_v45 = vadd.s32 %v215_v42, %v214_v41  ;;  %p438_p5 = pnand %p437_p2, %p431_p0 }
  0x4a   : > { %v219_v46 = vadd.s32 %v217_v44, %v216_v43 }
  0x4c   : > { %v220_v47 = vadd.s32 %v219_v46, %v218_v45 }
  0x4e   : > { %222 = vst [vmem:[%s150_s29] sm:$0xff] %v220_v47 }
  0x4f   : > { %441 = shalt.err (!%p438_p5)
}
  0x50   : > { %s442_s22 = scalar_lea.hbm %s664_s12, 128  ;;  %s446_s25 = scalar_lea.hbm %s714_s1, 256 }
  0x51   : > { %p443_p4 = scmp.ne.s32.totalorder %s664_s12, %s442_s22  ;;  %p447_p12 = scmp.lt.u32.totalorder %s664_s12, %s714_s1 }
  0x52   : > { %p448_p1 = scmp.lt.u32.totalorder %s446_s25, %s442_s22  ;;  %p450_p8 = scmp.lt.u32.totalorder %s442_s22, %s664_s12 }
  0x53   : > { %p444_p7 = pnand %p443_p4, %p722_p9 }
  0x54   : > { %p449_p3 = por %p448_p1, %p447_p12 }
  0x55   : > { %p445_p10 = pneg %p444_p7 }
  0x56   : > { %p451_p11 = por %p450_p8, %p449_p3 }
  0x58   : > { %p452_p0 = pnand %p451_p11, %p445_p10 }
  0x5a   : > { %455 = shalt.err (!%p452_p0)
}
  0x5b   : > { %335 = dma.vmem_to_hbm [thread:$0]  (%p722_p9), %s666_s30, 128, %s664_s12, %s224_s13  }
  0x5c PF: > { %s249_s3 = sand.u32 1, %s490_s6   ;;  %p723_p6 = scmp.ne.s32.totalorder %s719_s21, 0 }
  0x5d   : > { %p724_p13 = scmp.ge.s32.totalorder %s510_s11, 2  ;;  %s250_s4 = scalar_lea.sflag [#allocation4], %s249_s3 }
  0x5f   : > { %p342_p2 = pnand %p724_p13, %p723_p6 }
  0x61   : > { %485 = dma.done.wait (!%p342_p2), %s250_s4, 128  }
  0x62   : > { %487 = vsyncadd (!%p342_p2), %s250_s4, 4294967168  ;;  %s17_s11 = sadd.s32 1, %s510_s11   ;;  %s725_s6 = smov %s494_s7 }
  0x63   : > { %p14_p5 = scmp.ge.s32.totalorder %s17_s11, 4   ;;  %s726_s7 = smov %s498_s8 }
  0x64   : > { %s727_s8 = smov %s583_s20  ;;  %s728_s9 = smov %s506_s10 }
  0x65   : > { %s729_s10 = smov %s731_s14  ;;  %16 = sbr.rel (!%p14_p5) target bundleno = 6 (0x6), region = 73 }
  0x6c   :  { %255 = vsyncpa [#allocation3], 1 }
  0x6d   :  { %257 = vsyncpa [#allocation3 + $0x1], 1 }
  0x6e   :  { %258 = vsyncpa [#allocation4], 1 }
  0x6f   :  { %260 = vsyncpa [#allocation4 + $0x1], 1 }

</bundles_post_ra>
